<compile_context>
chip_gen: v6e
topology: v6e:2x2x1
jax: 0.10.0
libtpu: 0.0.40
codegen_flags: <defaults>
</compile_context>

<pallas_src>
import jax
import jax.numpy as jnp
from jax.experimental import pallas as pl
from jax.experimental.pallas import tpu as pltpu


# ------------------------------- kernel ------------------------------------
# Param slab layout (f32, shape (144, 64)); every row offset is a multiple of
# 8 sublanes, lane offset 0:
#   rows   0: 24, lanes 0:64 -> W1^T  (24, 64)
#   rows  24: 88, lanes 0:32 -> W2^T  (64, 32)
#   rows  88:120, lanes 0: 4 -> W3^T  (32,  4)
#   row  120    , lanes 0:64 -> b1
#   row  128    , lanes 0:32 -> b2
#   row  136    , lanes 0: 4 -> b3
def munet_kernel(x_ref, p_ref, o_ref):
    x = x_ref[...]                                    # (tb, 24), f32 or bf16

    w1 = p_ref[0:24, 0:64]                            # (24, 64)
    w2 = p_ref[24:88, 0:32]                            # (64, 32)
    w3 = p_ref[88:120, 0:4]                            # (32, 4)
    b1 = p_ref[120:121, 0:64]                          # (1, 64)
    b2 = p_ref[128:129, 0:32]                          # (1, 32)
    b3 = p_ref[136:137, 0:4]                           # (1, 4)

    # bf16 x is promoted to f32 for the dot; accumulation is always f32.
    h1 = jnp.maximum(
        jnp.dot(x, w1, preferred_element_type=jnp.float32) + b1, 0.0)
    h2 = jnp.maximum(
        jnp.dot(h1, w2, preferred_element_type=jnp.float32) + b2, 0.0)
    mu = jnp.tanh(
        jnp.dot(h2, w3, preferred_element_type=jnp.float32) + b3)

    o_ref[...] = mu.astype(o_ref.dtype)


# ------------------------------ wrapper -------------------------------------
def _round_up(n, m):
    return ((n + m - 1) // m) * m


def pack_params(params):
    """Pack PyTorch-convention params into one TPU-friendly (144, 64) f32 slab."""
    w1, b1, w2, b2, w3, b3 = params                   # w: (out,in), b: (out,)
    slab = jnp.zeros((144, 64), jnp.float32)
    slab = slab.at[0:24, 0:64].set(w1.T.astype(jnp.float32))    # (24, 64)
    slab = slab.at[24:88, 0:32].set(w2.T.astype(jnp.float32))   # (64, 32)
    slab = slab.at[88:120, 0:4].set(w3.T.astype(jnp.float32))   # (32, 4)
    slab = slab.at[120, 0:64].set(b1.reshape(-1).astype(jnp.float32))
    slab = slab.at[128, 0:32].set(b2.reshape(-1).astype(jnp.float32))
    slab = slab.at[136, 0:4].set(b3.reshape(-1).astype(jnp.float32))
    return slab


def munet_forward(x, packed_params, *, batch_tile=4096):
    """MuNet forward pass.

    x: (B, 24) observations, f32 or bf16 (bf16 halves the dominant HBM read).
    packed_params: (144, 64) f32 slab from pack_params().
    Returns (B, 4) f32 actions in [-1, 1].
    """
    B, F = x.shape
    assert F == 24, "MuNet expects 24-dim observations"

    # Row-tile granularity: keeps the batch block sublane-aligned for the
    # input dtype (8 rows for f32, 16 for bf16, 32 for int8).
    itemsize = jnp.dtype(x.dtype).itemsize
    row_align = max(8, 32 // itemsize)

    # 1) Large batch tile: amortize the ~0.35us/grid-step overhead.  tb=4096
    #    (f32) uses ~8 MiB of double-buffered VMEM -> fits default scoped VMEM
    #    on v5e/v6e/v7x.  For batch_tile > 4096, add
    #    pltpu.CompilerParams(vmem_limit_bytes=...) headroom.
    tb = _round_up(min(batch_tile, _round_up(B, row_align)), row_align)

    # 3) Guarantee >= 2 grid steps for large batches so both v7x TensorCores
    #    get work via the "parallel" batch axis.
    if B >= 256 and pl.cdiv(B, tb) < 2:
        tb = _round_up(pl.cdiv(B, 2), row_align)

    # 2) No host-side padding: ragged boundary block handled by Pallas.
    grid = (pl.cdiv(B, tb),)

    flops = 2 * B * (24 * 64 + 64 * 32 + 32 * 4)
    bytes_accessed = (int(x.size) * itemsize            # observation stream
                      + B * 4 * 4                       # (B, 4) f32 output
                      + 144 * 64 * 4)                   # resident param slab

    return pl.pallas_call(
        munet_kernel,
        out_shape=jax.ShapeDtypeStruct((B, 4), jnp.float32),
        grid_spec=pltpu.PrefetchScalarGridSpec(
            num_scalar_prefetch=0,
            grid=grid,
            in_specs=[
                # Batch tile; last (ragged) block's OOB rows are discarded.
                pl.BlockSpec((tb, 24), lambda i: (i, 0)),
                # Constant index_map -> slab stays VMEM-resident across steps.
                pl.BlockSpec((144, 64), lambda i: (0, 0)),
            ],
            out_specs=pl.BlockSpec((tb, 4), lambda i: (i, 0)),
        ),
        compiler_params=pltpu.CompilerParams(
            dimension_semantics=("parallel",)),
        cost_estimate=pl.CostEstimate(
            flops=flops,
            transcendentals=4 * B,          # tanh
            bytes_accessed=bytes_accessed),
    )(x, packed_params)


# ----------------------------- init / reference ------------------------------
def init_params(key):
    """Deterministic init mimicking PyTorch nn.Linear default (uniform +/-1/sqrt(fan_in))."""
    def linear(key, out_f, in_f):
        kw, kb = jax.random.split(key)
        bound = 1.0 / jnp.sqrt(in_f)
        w = jax.random.uniform(kw, (out_f, in_f), jnp.float32, -bound, bound)
        b = jax.random.uniform(kb, (out_f,), jnp.float32, -bound, bound)
        return w, b

    k1, k2, k3 = jax.random.split(key, 3)
    w1, b1 = linear(k1, 64, 24)
    w2, b2 = linear(k2, 32, 64)
    w3, b3 = linear(k3, 4, 32)
    return (w1, b1, w2, b2, w3, b3)


def munet_ref(x, params):
    """Pure-JAX reference for correctness check."""
    w1, b1, w2, b2, w3, b3 = params
    h1 = jax.nn.relu(x @ w1.T + b1)
    h2 = jax.nn.relu(h1 @ w2.T + b2)
    return jnp.tanh(h2 @ w3.T + b3)


# --------------------------------- main --------------------------------------
if __name__ == "__main__":
    key = jax.random.PRNGKey(0)
    kx, kx2, kp = jax.random.split(key, 3)

    params = init_params(kp)
    packed = pack_params(params)                      # packed once, reused

    # Small f32 batch: single grid step, block exactly (8, 24).
    B = 8
    x = jax.random.normal(kx, (B, 24), jnp.float32)
    out = jax.block_until_ready(munet_forward(x, packed))
    ref = munet_ref(x, params)
    assert out.shape == (B, 4)
    assert jnp.allclose(out, ref, atol=1e-5, rtol=1e-5), "mismatch (B=8, f32)"

    # Larger, non-aligned batch with bf16 observations: exercises the ragged
    # last block, the >=2-step "parallel" batch grid (B=300 -> tb=160, 2
    # steps) and the bf16 input path (weights stay f32, accumulation f32).
    B2 = 300
    x2_f32 = jax.random.normal(kx2, (B2, 24), jnp.float32)
    x2 = x2_f32.astype(jnp.bfloat16)                  # observations stored bf16
    out2 = jax.block_until_ready(munet_forward(x2, packed))
    ref2 = munet_ref(x2.astype(jnp.float32), params)  # same bf16-quantized obs
    assert out2.shape == (B2, 4)
    assert jnp.allclose(out2, ref2, atol=1e-4, rtol=1e-4), "mismatch (B=300, bf16)"

    print("KERNEL_OK")
</pallas_src>

<mosaic_0001>
module attributes {stable_mosaic.version = 11 : i64} {
  func.func @munet_kernel(%arg0: i32, %arg1: memref<8x24xf32, #tpu.memory_space<vmem>>, %arg2: memref<144x64xf32, #tpu.memory_space<vmem>>, %arg3: memref<8x4xf32, #tpu.memory_space<vmem>>) attributes {dimension_semantics = [#tpu.dimension_semantics<parallel>], iteration_bounds = array<i64: 1>, scalar_prefetch = 0 : i64, scratch_operands = 0 : i64, tpu.core_type = #tpu.core_type<tc>, window_params = [{transform_indices = @transform_0, window_bounds = array<i64: 8, 24>}, {pipeline_mode = #tpu.pipeline_mode<synchronous>, transform_indices = @transform_1, window_bounds = array<i64: 144, 64>}, {transform_indices = @transform_2, window_bounds = array<i64: 8, 4>}]} {
    %c0 = arith.constant 0 : index
    %c0_0 = arith.constant 0 : index
    %0 = vector.load %arg1[%c0, %c0_0] : memref<8x24xf32, #tpu.memory_space<vmem>>, vector<8x24xf32>
    %c0_1 = arith.constant 0 : index
    %c0_2 = arith.constant 0 : index
    %1 = vector.load %arg2[%c0_1, %c0_2] : memref<144x64xf32, #tpu.memory_space<vmem>>, vector<24x64xf32>
    %c24 = arith.constant 24 : index
    %c0_3 = arith.constant 0 : index
    %2 = vector.load %arg2[%c24, %c0_3] : memref<144x64xf32, #tpu.memory_space<vmem>>, vector<64x32xf32>
    %c88 = arith.constant 88 : index
    %c0_4 = arith.constant 0 : index
    %3 = vector.load %arg2[%c88, %c0_4] : memref<144x64xf32, #tpu.memory_space<vmem>>, vector<32x4xf32>
    %c120 = arith.constant 120 : index
    %c0_5 = arith.constant 0 : index
    %4 = vector.load %arg2[%c120, %c0_5] : memref<144x64xf32, #tpu.memory_space<vmem>>, vector<1x64xf32>
    %c128 = arith.constant 128 : index
    %c0_6 = arith.constant 0 : index
    %5 = vector.load %arg2[%c128, %c0_6] : memref<144x64xf32, #tpu.memory_space<vmem>>, vector<1x32xf32>
    %c136 = arith.constant 136 : index
    %c0_7 = arith.constant 0 : index
    %6 = vector.load %arg2[%c136, %c0_7] : memref<144x64xf32, #tpu.memory_space<vmem>>, vector<1x4xf32>
    %cst = arith.constant dense<0.000000e+00> : vector<8x64xf32>
    %7 = tpu.matmul %0, %1, %cst {dimension_numbers = #tpu.dot_dimension_numbers<[1], [0], [0], [1], [0, 0, 1, 1], [], []>} : vector<8x24xf32>, vector<24x64xf32>, vector<8x64xf32> -> vector<8x64xf32>
    %8 = vector.broadcast %4 : vector<1x64xf32> to vector<8x64xf32>
    %9 = arith.addf %7, %8 : vector<8x64xf32>
    %cst_8 = arith.constant 0.000000e+00 : f32
    %10 = vector.broadcast %cst_8 : f32 to vector<8x64xf32>
    %11 = arith.maximumf %9, %10 : vector<8x64xf32>
    %cst_9 = arith.constant dense<0.000000e+00> : vector<8x32xf32>
    %12 = tpu.matmul %11, %2, %cst_9 {dimension_numbers = #tpu.dot_dimension_numbers<[1], [0], [0], [1], [0, 0, 1, 1], [], []>} : vector<8x64xf32>, vector<64x32xf32>, vector<8x32xf32> -> vector<8x32xf32>
    %13 = vector.broadcast %5 : vector<1x32xf32> to vector<8x32xf32>
    %14 = arith.addf %12, %13 : vector<8x32xf32>
    %cst_10 = arith.constant 0.000000e+00 : f32
    %15 = vector.broadcast %cst_10 : f32 to vector<8x32xf32>
    %16 = arith.maximumf %14, %15 : vector<8x32xf32>
    %cst_11 = arith.constant dense<0.000000e+00> : vector<8x4xf32>
    %17 = tpu.matmul %16, %3, %cst_11 {dimension_numbers = #tpu.dot_dimension_numbers<[1], [0], [0], [1], [0, 0, 1, 1], [], []>} : vector<8x32xf32>, vector<32x4xf32>, vector<8x4xf32> -> vector<8x4xf32>
    %18 = vector.broadcast %6 : vector<1x4xf32> to vector<8x4xf32>
    %19 = arith.addf %17, %18 : vector<8x4xf32>
    %20 = math.tanh %19 : vector<8x4xf32>
    %c0_12 = arith.constant 0 : index
    %c0_13 = arith.constant 0 : index
    %21 = vector.load %arg3[%c0_12, %c0_13] : memref<8x4xf32, #tpu.memory_space<vmem>>, vector<8x4xf32>
    tpu.vector_store %arg3[%c0_12, %c0_13], %20 {strides = array<i32>} : memref<8x4xf32, #tpu.memory_space<vmem>>, vector<8x4xf32>,
    return
  }
  func.func @transform_0(%arg0: i32) -> (i32, i32) {
    %c0_i32 = arith.constant 0 : i32
    %c0_i32_0 = arith.constant 0 : i32
    return %arg0, %c0_i32 : i32, i32
  }
  func.func @transform_1(%arg0: i32) -> (i32, i32) {
    %c0_i32 = arith.constant 0 : i32
    %c0_i32_0 = arith.constant 0 : i32
    %c0_i32_1 = arith.constant 0 : i32
    return %c0_i32, %c0_i32_0 : i32, i32
  }
  func.func @transform_2(%arg0: i32) -> (i32, i32) {
    %c0_i32 = arith.constant 0 : i32
    %c0_i32_0 = arith.constant 0 : i32
    return %arg0, %c0_i32 : i32, i32
  }
}

</mosaic_0001>

<bundles_post_ra>
// kernel: tpu_custom_call.1
= control target key start
LH: loop header
LB: loop body
LE: loop exit
PB: predicated region body
PF: predicated region fallthrough
CT: control target
= control target key end

     0   :  { %v340_v0 = vmov 0.0   ;;  %vm341_vm0 = vmmov 0   ;;  %vm34_vm1 = vcmask 195584   ;;  %vm113_vm2 = vcmask 523264   ;;  %s420_s1 = inlined_call_operand.vmem [shape: f32[144,64], index: 1, kind: input, shape index: {}]   ;;  %s421_s0 = inlined_call_operand.vmem [shape: f32[8,24], index: 0, kind: input, shape index: {}]   ;;  %s422_s2 = inlined_call_operand.vmem [shape: f32[8,4], index: 2, kind: output, shape index: {}]  }
   0x1   :  { %297 = vmatprep.subr.mxu0 %v340_v0  ;;  %v14_v1 = vld [vmem:[%s420_s1 + $0x10] sm:$0xff]  ;;  %v13_v2 = vld [vmem:[%s420_s1 + $0x8] sm:$0xff]  ;;  %303 = vmatprep.mubr.msk.f32.mxu0 %vm341_vm0, %v340_v0  ;;  %v12_v5 = vld [vmem:[%s420_s1] sm:$0xff]  ;;  %vm192_vm3 = vcmask 261120   ;;  %vm267_vm4 = vcmask 31744  }
   0x2   :  { %298 = vmatpush3.msra.mxu0 %v14_v1  ;;  %306 = vmatprep.subr.mxu1 %v340_v0  ;;  %v22_v3 = vld [vmem:[%s420_s1 + $0x50] sm:$0xff]  ;;  %v21_v4 = vld [vmem:[%s420_s1 + $0x48] sm:$0xff]  ;;  %v11_v6 = vld [vmem:[%s421_s0] sm:$0xff] }
   0x3   :  { %299 = vmatprep.subr.mxu0 %v340_v0  ;;  %307 = vmatpush3.msra.mxu1 %v22_v3  ;;  %v20_v7 = vld [vmem:[%s420_s1 + $0x40] sm:$0xff]  ;;  %v19_v8 = vld [vmem:[%s420_s1 + $0x38] sm:$0xff]  ;;  %v18_v9 = vld [vmem:[%s420_s1 + $0x30] sm:$0xff] }
   0x4   :  { %300 = vmatpush3.msra.mxu0 %v13_v2  ;;  %308 = vmatprep.subr.mxu1 %v340_v0  ;;  %v17_v10 = vld [vmem:[%s420_s1 + $0x28] sm:$0xff]  ;;  %v16_v11 = vld [vmem:[%s420_s1 + $0x20] sm:$0xff]  ;;  %v15_v12 = vld [vmem:[%s420_s1 + $0x18] sm:$0xff] }
   0x5   :  { %301 = vmatprep.subr.mxu0 %v340_v0  ;;  %309 = vmatpush3.msra.mxu1 %v21_v4  ;;  %v26_v13 = vld [vmem:[%s420_s1 + $0x70] sm:$0xff]  ;;  %v273_v14 = vld [vmem:[%s420_s1 + $0x78] ss:$0 sm:$0xff]  ;;  %v25_v19 = vld [vmem:[%s420_s1 + $0x68] sm:$0xff] }
   0x6   :  { %302 = vmatpush3.msra.mxu0 %v12_v5  ;;  %310 = vmatprep.subr.mxu1 %v340_v0  ;;  %v24_v20 = vld [vmem:[%s420_s1 + $0x60] sm:$0xff]  ;;  %v23_v21 = vld [vmem:[%s420_s1 + $0x58] sm:$0xff]  ;;  %v277_v27 = vld [vmem:[%s420_s1 + $0x88] ss:$0 sm:$0xff] }
   0x7   :  { %304 = vmatmul.mubr.msk.f32.vlgmr.msra.gmra.mxu0 %vm34_vm1, %v11_v6  ;;  %311 = vmatpush3.msra.mxu1 %v20_v7  ;;  %v275_v22 = vld [vmem:[%s420_s1 + $0x80] ss:$0 sm:$0xff] }
   0x8   :  { %312 = vmatprep.subr.mxu1 %v340_v0  ;;  %322 = vmatprep.mubr.msk.f32.mxu1 %vm341_vm0, %v340_v0 }
   0x9   :  { %313 = vmatpush3.msra.mxu1 %v19_v8  ;;  %325 = vmatprep.subr.mxu0 %v340_v0 }
   0xa   :  { %314 = vmatprep.subr.mxu1 %v340_v0  ;;  %333 = vmatprep.mubr.msk.f32.mxu0 %vm341_vm0, %v340_v0 }
   0xb   :  { %315 = vmatpush3.msra.mxu1 %v18_v9  ;;  %326 = vmatpush3.msra.mxu0 %v26_v13 }
   0xc   :  { %316 = vmatprep.subr.mxu1 %v340_v0  ;;  %327 = vmatprep.subr.mxu0 %v340_v0 }
   0xd   :  { %317 = vmatpush3.msra.mxu1 %v17_v10  ;;  %328 = vmatpush3.msra.mxu0 %v25_v19 }
   0xe   :  { %318 = vmatprep.subr.mxu1 %v340_v0  ;;  %329 = vmatprep.subr.mxu0 %v340_v0 }
   0xf   :  { %319 = vmatpush3.msra.mxu1 %v16_v11  ;;  %330 = vmatpush3.msra.mxu0 %v24_v20 }
  0x10   :  { %320 = vmatprep.subr.mxu1 %v340_v0  ;;  %331 = vmatprep.subr.mxu0 %v340_v0 }
  0x11   :  { %321 = vmatpush3.msra.mxu1 %v15_v12  ;;  %332 = vmatpush3.msra.mxu0 %v23_v21 }
  0xc7   :  { %v104_v15 = vpop.f32.mrf.mxu0 }
  0xc8   :  { %v105_v16 = vadd.f32 %v273_v14, %v104_v15 }
  0xc9   :  { %v305_v17 = vpop.f32.mrf.mxu0 }
  0xca   :  { %v108_v18 = vmax.f32 %v105_v16, 0.0 }
  0xcc   :  { %323 = vmatmul.mubr.msk.f32.vlgmr.msra.gmra.mxu1 %vm113_vm2, %v108_v18 }
 0x18c   :  { %v183_v23 = vpop.f32.mrf.mxu1 }
 0x18d   :  { %v184_v24 = vadd.f32 %v275_v22, %v183_v23 }
 0x18e   :  { %v324_v25 = vpop.f32.mrf.mxu1 }
 0x18f   :  { %v187_v26 = vmax.f32 %v184_v24, 0.0 }
 0x191   :  { %334 = vmatmul.mubr.msk.f32.vlgmr.msra.gmra.mxu0 %vm192_vm3, %v187_v26 }
 0x251   :  { %v262_v28 = vpop.f32.mrf.mxu0 }
 0x252   :  { %v263_v29 = vadd.f32 %v277_v27, %v262_v28 }
 0x253   :  { %v335_v30 = vpop.f32.mrf.mxu0 }
 0x254   :  { %338 = vtanh.f32 %v263_v29 }
 0x261   :  { %v339_v31 = vpop.eup %338 }
 0x262   :  { %268 = vst.msk [vmem:[%s422_s2] sm:$0xff] %vm267_vm4, %v339_v31 }

</bundles_post_ra>
